<compile_context>
chip_gen: v6e
topology: v6e:2x2x1
jax: 0.10.0
libtpu: 0.0.40
codegen_flags: <defaults>
</compile_context>

<pallas_src>
import jax
import jax.numpy as jnp
from jax.experimental import pallas as pl
from jax.experimental.pallas import tpu as pltpu

IN_DIM = 768
HID_DIM = 512


def _round_up(x, m):
    return (x + m - 1) // m * m


def _critic_kernel(x_ref, w1_ref, b1_ref, w2_ref, b2_ref, o_ref):
    # x_ref:  [TM, 768]  bf16   (pipelined per grid step)
    # w1_ref: [768, 512] bf16   (resident across grid)
    # b1_ref: [1, 512]   f32    (resident)
    # w2_ref: [1, 512]   f32    (resident; row form of the [512,1] weight)
    # b2_ref: [1]        f32    (SMEM scalar)
    # o_ref:  [TM, 1]    f32

    # MXU matmul: bf16 inputs, f32 accumulation.
    h = jnp.dot(x_ref[...], w1_ref[...], preferred_element_type=jnp.float32)
    # Bias + ReLU in f32 (v5e VPU has no bf16 path; accumulator is already f32).
    h = jnp.maximum(h + b1_ref[...], 0.0)
    # TODO(synk): Dropout(p=args.dropout) is identity in eval mode; no RNG masking applied.

    # Second linear has out-features = 1: do it on the VPU/XLU instead of the MXU.
    v = jnp.sum(h * w2_ref[...], axis=-1, keepdims=True) + b2_ref[0]
    o_ref[...] = v.astype(o_ref.dtype)


def critic_forward(state, w1, b1, w2, b2, *, tile_m=256):
    """state: [B, 768] float32 -> returns [B] (squeezed value)."""
    B = state.shape[0]
    # bf16 activation tiles want a sublane multiple of 16.
    TM = min(tile_m, _round_up(B, 16))
    B_pad = _round_up(B, TM)
    num_tiles = B_pad // TM

    # Cast the heavy operands to bf16 (halves HBM traffic); keep biases / w2 in f32.
    x = state.astype(jnp.bfloat16)
    if B_pad != B:
        x = jnp.pad(x, ((0, B_pad - B), (0, 0)))
    w1_b = w1.astype(jnp.bfloat16)                       # [768, 512] bf16
    b1_r = b1.reshape(1, HID_DIM).astype(jnp.float32)    # [1, 512]
    w2_row = w2.reshape(1, HID_DIM).astype(jnp.float32)  # [1, 512]  (row form of [512,1])
    b2_s = b2.reshape(1).astype(jnp.float32)             # [1] scalar in SMEM

    flops = 2 * B_pad * IN_DIM * HID_DIM + 2 * B_pad * HID_DIM
    bytes_accessed = (B_pad * IN_DIM * 2          # x bf16
                      + IN_DIM * HID_DIM * 2      # W1 bf16
                      + 2 * HID_DIM * 4 + 4       # b1, w2_row, b2
                      + B_pad * 4)                # output

    out = pl.pallas_call(
        _critic_kernel,
        out_shape=jax.ShapeDtypeStruct((B_pad, 1), jnp.float32),
        grid=(num_tiles,),
        in_specs=[
            pl.BlockSpec((TM, IN_DIM), lambda i: (i, 0)),        # x tile (streamed)
            pl.BlockSpec((IN_DIM, HID_DIM), lambda i: (0, 0)),   # W1 (resident)
            pl.BlockSpec((1, HID_DIM), lambda i: (0, 0)),        # b1 (resident)
            pl.BlockSpec((1, HID_DIM), lambda i: (0, 0)),        # w2 row (resident)
            pl.BlockSpec(memory_space=pltpu.SMEM),               # b2 scalar
        ],
        out_specs=pl.BlockSpec((TM, 1), lambda i: (i, 0)),
        compiler_params=pltpu.CompilerParams(
            dimension_semantics=("parallel",),        # shards batch tiles over v7x's 2 TCs
            vmem_limit_bytes=32 * 1024 * 1024,        # safe on v5e/v6e (128 MiB) and v7x (64 MiB)
        ),
        cost_estimate=pl.CostEstimate(
            flops=flops, transcendentals=0, bytes_accessed=bytes_accessed),
    )(x, w1_b, b1_r, w2_row, b2_s)

    # .squeeze() like the PyTorch module; drop batch padding.
    return jnp.squeeze(out, axis=-1)[:B]


def init_params(key):
    k1, k2, k3, k4 = jax.random.split(key, 4)
    # deterministic, PyTorch-Linear-like uniform init
    bound1 = 1.0 / (IN_DIM ** 0.5)
    bound2 = 1.0 / (HID_DIM ** 0.5)
    w1 = jax.random.uniform(k1, (IN_DIM, HID_DIM), jnp.float32, -bound1, bound1)
    b1 = jax.random.uniform(k2, (1, HID_DIM), jnp.float32, -bound1, bound1)
    w2 = jax.random.uniform(k3, (HID_DIM, 1), jnp.float32, -bound2, bound2)
    b2 = jax.random.uniform(k4, (1, 1), jnp.float32, -bound2, bound2)
    return w1, b1, w2, b2


if __name__ == "__main__":
    key = jax.random.PRNGKey(0)
    kp, kx = jax.random.split(key)
    w1, b1, w2, b2 = init_params(kp)

    B = 8
    state = jax.random.normal(kx, (B, IN_DIM), jnp.float32)

    value = critic_forward(state, w1, b1, w2, b2)
    jax.block_until_ready(value)
    assert value.shape == (B,)

    # Reference with the same bf16 rounding of x / W1 (f32 accumulation), f32 tail.
    x_r = state.astype(jnp.bfloat16).astype(jnp.float32)
    w1_r = w1.astype(jnp.bfloat16).astype(jnp.float32)
    h_ref = jnp.maximum(x_r @ w1_r + b1, 0.0)
    ref = jnp.squeeze(h_ref @ w2 + b2, axis=-1)
    assert jnp.allclose(value, ref, atol=1e-3, rtol=1e-3), \
        float(jnp.max(jnp.abs(value - ref)))

    # Loose sanity check against the full-f32 PyTorch-equivalent reference.
    ref_f32 = jnp.squeeze(jnp.maximum(state @ w1 + b1, 0.0) @ w2 + b2, axis=-1)
    assert jnp.allclose(value, ref_f32, atol=5e-2, rtol=5e-2)

    print("KERNEL_OK")
</pallas_src>

<mosaic_0001>
module attributes {stable_mosaic.version = 11 : i64} {
  func.func @_critic_kernel(%arg0: i32, %arg1: memref<16x768xbf16, #tpu.memory_space<vmem>>, %arg2: memref<768x512xbf16, #tpu.memory_space<vmem>>, %arg3: memref<1x512xf32, #tpu.memory_space<vmem>>, %arg4: memref<1x512xf32, #tpu.memory_space<vmem>>, %arg5: memref<1xf32, #tpu.memory_space<smem>>, %arg6: memref<16x1xf32, #tpu.memory_space<vmem>>) attributes {dimension_semantics = [#tpu.dimension_semantics<parallel>], iteration_bounds = array<i64: 1>, scalar_prefetch = 0 : i64, scratch_operands = 0 : i64, tpu.core_type = #tpu.core_type<tc>, window_params = [{transform_indices = @transform_0, window_bounds = array<i64: 16, 768>}, {pipeline_mode = #tpu.pipeline_mode<synchronous>, transform_indices = @transform_1, window_bounds = array<i64: 768, 512>}, {pipeline_mode = #tpu.pipeline_mode<synchronous>, transform_indices = @transform_2, window_bounds = array<i64: 1, 512>}, {pipeline_mode = #tpu.pipeline_mode<synchronous>, transform_indices = @transform_3, window_bounds = array<i64: 1, 512>}, {transform_indices = @transform_4, window_bounds = array<i64: 1>}, {transform_indices = @transform_5, window_bounds = array<i64: 16, 1>}]} {
    %c0 = arith.constant 0 : index
    %c0_0 = arith.constant 0 : index
    %0 = vector.load %arg1[%c0, %c0_0] : memref<16x768xbf16, #tpu.memory_space<vmem>>, vector<16x768xbf16>
    %c0_1 = arith.constant 0 : index
    %c0_2 = arith.constant 0 : index
    %1 = vector.load %arg2[%c0_1, %c0_2] : memref<768x512xbf16, #tpu.memory_space<vmem>>, vector<768x512xbf16>
    %cst = arith.constant dense<0.000000e+00> : vector<16x512xf32>
    %2 = tpu.matmul %0, %1, %cst {dimension_numbers = #tpu.dot_dimension_numbers<[1], [0], [0], [1], [0, 0, 1, 1], [], []>} : vector<16x768xbf16>, vector<768x512xbf16>, vector<16x512xf32> -> vector<16x512xf32>
    %c0_3 = arith.constant 0 : index
    %c0_4 = arith.constant 0 : index
    %3 = vector.load %arg3[%c0_3, %c0_4] : memref<1x512xf32, #tpu.memory_space<vmem>>, vector<1x512xf32>
    %4 = vector.broadcast %3 : vector<1x512xf32> to vector<16x512xf32>
    %5 = arith.addf %2, %4 : vector<16x512xf32>
    %cst_5 = arith.constant 0.000000e+00 : f32
    %6 = vector.broadcast %cst_5 : f32 to vector<16x512xf32>
    %7 = arith.maximumf %5, %6 : vector<16x512xf32>
    %c0_6 = arith.constant 0 : index
    %c0_7 = arith.constant 0 : index
    %8 = vector.load %arg4[%c0_6, %c0_7] : memref<1x512xf32, #tpu.memory_space<vmem>>, vector<1x512xf32>
    %9 = vector.broadcast %8 : vector<1x512xf32> to vector<16x512xf32>
    %10 = arith.mulf %7, %9 : vector<16x512xf32>
    %cst_8 = arith.constant dense<0.000000e+00> : vector<16xf32>
    %11 = vector.multi_reduction <add>, %10, %cst_8 [1] : vector<16x512xf32> to vector<16xf32>
    %12 = vector.shape_cast %11 : vector<16xf32> to vector<16x1xf32>
    %c0_9 = arith.constant 0 : index
    %13 = memref.load %arg5[%c0_9] : memref<1xf32, #tpu.memory_space<smem>>
    %14 = vector.broadcast %13 : f32 to vector<16x1xf32>
    %15 = arith.addf %12, %14 : vector<16x1xf32>
    %c0_10 = arith.constant 0 : index
    %c0_11 = arith.constant 0 : index
    %16 = vector.load %arg6[%c0_10, %c0_11] : memref<16x1xf32, #tpu.memory_space<vmem>>, vector<16x1xf32>
    tpu.vector_store %arg6[%c0_10, %c0_11], %15 {strides = array<i32>} : memref<16x1xf32, #tpu.memory_space<vmem>>, vector<16x1xf32>,
    return
  }
  func.func @transform_0(%arg0: i32) -> (i32, i32) {
    %c0_i32 = arith.constant 0 : i32
    %c0_i32_0 = arith.constant 0 : i32
    return %arg0, %c0_i32 : i32, i32
  }
  func.func @transform_1(%arg0: i32) -> (i32, i32) {
    %c0_i32 = arith.constant 0 : i32
    %c0_i32_0 = arith.constant 0 : i32
    %c0_i32_1 = arith.constant 0 : i32
    return %c0_i32, %c0_i32_0 : i32, i32
  }
  func.func @transform_2(%arg0: i32) -> (i32, i32) {
    %c0_i32 = arith.constant 0 : i32
    %c0_i32_0 = arith.constant 0 : i32
    %c0_i32_1 = arith.constant 0 : i32
    return %c0_i32, %c0_i32_0 : i32, i32
  }
  func.func @transform_3(%arg0: i32) -> (i32, i32) {
    %c0_i32 = arith.constant 0 : i32
    %c0_i32_0 = arith.constant 0 : i32
    %c0_i32_1 = arith.constant 0 : i32
    return %c0_i32, %c0_i32_0 : i32, i32
  }
  func.func @transform_4(%arg0: i32) -> i32 {
    %c0_i32 = arith.constant 0 : i32
    %c0_i32_0 = arith.constant 0 : i32
    return %c0_i32 : i32
  }
  func.func @transform_5(%arg0: i32) -> (i32, i32) {
    %c0_i32 = arith.constant 0 : i32
    %c0_i32_0 = arith.constant 0 : i32
    return %arg0, %c0_i32 : i32, i32
  }
}

</mosaic_0001>

<bundles_post_ra>
// kernel: tpu_custom_call.1
= control target key start
LH: loop header
LB: loop body
LE: loop exit
PB: predicated region body
PF: predicated region fallthrough
CT: control target
= control target key end

     0   :  { %11 = vsyncpa [#allocation4], 0  ;;  %s2233_s0 = inlined_call_operand.hbm [shape: bf16[16,768], index: 0, kind: input, shape index: {}]   ;;  %s2234_s1 = inlined_call_operand.hbm [shape: bf16[768,512], index: 1, kind: input, shape index: {}]   ;;  %s2235_s2 = inlined_call_operand.vmem [shape: f32[1,512], index: 2, kind: input, shape index: {}]   ;;  %s2236_s3 = inlined_call_operand.hbm [shape: f32[1,512], index: 3, kind: input, shape index: {}]   ;;  %s2237_s4 = inlined_call_operand.<no memory space> [shape: f32[1], index: 4, kind: input, shape index: {}]   ;;  %s2238_s5 = inlined_call_operand.vmem [shape: f32[16,1], index: 5, kind: output, shape index: {}]  }
   0x1   :  { %12 = vsyncpa [#allocation6], 0  ;;  %s2155_s18 = smov [#allocation5]  }
   0x2   :  { %s30_s19 = sshll.u32 %s2155_s18, 4  ;;  %s31_s19 = int_to_ptr.vmem [resolvable:$true] %s30_s19 }
   0x3   :  { %s2099_s20 = scalar_lea.vmem %s31_s19, 24576  ;;  %p2104_p1 = scmp.lt.s32.totalorder %s31_s19, %s31_s19 }
   0x4   :  { %p2100_p0 = scmp.ne.s32.totalorder %s31_s19, %s2099_s20  ;;  %p2105_p2 = scmp.lt.s32.totalorder %s2099_s20, %s2099_s20 }
   0x6   :  { %p2106_p3 = por %p2105_p2, %p2104_p1 }
   0x8   :  { %p2107_p4 = pnand %p2106_p3, %p2100_p0 }
   0xa   :  { %2110 = shalt.err (!%p2107_p4)
}
   0xb   :  { %s2156_s21 = smov 256   ;;  %s2157_s22 = smov 16  }
   0xc   :  { %36 = dma.hbm_to_vmem [thread:$0]  %s2234_s1, 24576, %s31_s19, [#allocation6], %s2156_s21, %s2156_s21, %s2157_s22  }
   0xd   :  { %s2158_s25 = smov [#allocation3]  }
   0xe   :  { %s18_s26 = sshll.u32 %s2158_s25, 4  ;;  %s19_s26 = int_to_ptr.vmem [resolvable:$true] %s18_s26 }
   0xf   :  { %s2119_s27 = scalar_lea.vmem %s19_s26, 768  ;;  %p2124_p6 = scmp.lt.s32.totalorder %s19_s26, %s19_s26 }
  0x10   :  { %p2120_p5 = scmp.ne.s32.totalorder %s19_s26, %s2119_s27  ;;  %p2125_p7 = scmp.lt.s32.totalorder %s2119_s27, %s2119_s27 }
  0x12   :  { %p2126_p8 = por %p2125_p7, %p2124_p6 }
  0x14   :  { %p2127_p9 = pnand %p2126_p8, %p2120_p5 }
  0x16   :  { %2130 = shalt.err (!%p2127_p9)
}
  0x17   :  { %s2159_s28 = smov 384   ;;  %s2160_s29 = smov 24  }
  0x18   :  { %24 = dma.hbm_to_vmem [thread:$0]  %s2233_s0, 768, %s19_s26, [#allocation4], %s2159_s28, %s2159_s28, %s2160_s29  }
  0x19   :  { %s2161_s7 = smov [#allocation7]  }
  0x1a   :  { %s45_s8 = sshll.u32 %s2161_s7, 4  ;;  %s46_s8 = int_to_ptr.vmem [resolvable:$true] %s45_s8 }
  0x1b   :  { %s2139_s1 = scalar_lea.vmem %s46_s8, 64  ;;  %p2144_p11 = scmp.lt.s32.totalorder %s46_s8, %s46_s8 }
  0x1c   :  { %p2140_p10 = scmp.ne.s32.totalorder %s46_s8, %s2139_s1  ;;  %p2145_p12 = scmp.lt.s32.totalorder %s2139_s1, %s2139_s1 }
  0x1e   :  { %p2146_p13 = por %p2145_p12, %p2144_p11 }
  0x20   :  { %p2147_p0 = pnand %p2146_p13, %p2140_p10 }
  0x22   :  { %2150 = shalt.err (!%p2147_p0)
}
  0x23   :  { %48 = dma.hbm_to_vmem [thread:$0]  %s2236_s3, 64, %s46_s8, [#allocation6]  }
  0x24   :  { %2151 = dma.done.wait [#allocation4], 768  }
  0x25   :  { %2152 = vsyncadd [#allocation4], 4294966528 }
  0x26   :  { %2153 = dma.done.wait [#allocation6], 24640  }
  0x27   :  { %2154 = vsyncadd [#allocation6], 4294942656  ;;  %v1794_v0 = vld [vmem:[#allocation5 + $0xe4] ss:$16 sps:$4 sm:$0xff]   ;;  %v1798_v2 = vld [vmem:[#allocation5 + $0xe0] ss:$16 sps:$4 sm:$0xff]  }
  0x28   :  { %v1796_v1 = vld [vmem:[#allocation5 + $0x2e4] ss:$16 sps:$4 sm:$0xff]   ;;  %1270 = vmatprep.subr.bf16.mxu0 %v1794_v0  ;;  %v1799_v3 = vld [vmem:[#allocation5 + $0x2e0] ss:$16 sps:$4 sm:$0xff]   ;;  %vm1580_vm0 = vcmask 7168  }
  0x29   :  { %1313 = vmatprep.subr.bf16.mxu1 %v1796_v1  ;;  %v1800_v4 = vld [vmem:[#allocation5 + $0xc4] ss:$16 sps:$4 sm:$0xff]   ;;  %1271 = vmatpush1.bf16.msra.mxu0 %v1798_v2  ;;  %v1804_v6 = vld [vmem:[#allocation5 + $0xc0] ss:$16 sps:$4 sm:$0xff]  }
  0x2a   :  { %1314 = vmatpush1.bf16.msra.mxu1 %v1799_v3  ;;  %v1802_v5 = vld [vmem:[#allocation5 + $0x2c4] ss:$16 sps:$4 sm:$0xff]   ;;  %1272 = vmatprep.subr.bf16.mxu0 %v1800_v4  ;;  %v1805_v7 = vld [vmem:[#allocation5 + $0x2c0] ss:$16 sps:$4 sm:$0xff]   ;;  %v1901_v3 = vld [vmem:[#allocation5 + $0xec] ss:$16 sps:$4 sm:$0xff]  }
  0x2b   :  { %1315 = vmatprep.subr.bf16.mxu1 %v1802_v5  ;;  %v1806_v8 = vld [vmem:[#allocation5 + $0xa4] ss:$16 sps:$4 sm:$0xff]   ;;  %v1810_v10 = vld [vmem:[#allocation5 + $0xa0] ss:$16 sps:$4 sm:$0xff]  }
  0x2c   :  { %v1808_v9 = vld [vmem:[#allocation5 + $0x2a4] ss:$16 sps:$4 sm:$0xff]   ;;  %v1811_v11 = vld [vmem:[#allocation5 + $0x2a0] ss:$16 sps:$4 sm:$0xff]  }
  0x2d   :  { %1273 = vmatpush1.bf16.msra.mxu0 %v1804_v6  ;;  %v1812_v12 = vld [vmem:[#allocation5 + $0x84] ss:$16 sps:$4 sm:$0xff]   ;;  %v1816_v14 = vld [vmem:[#allocation5 + $0x80] ss:$16 sps:$4 sm:$0xff]  }
  0x2e   :  { %1316 = vmatpush1.bf16.msra.mxu1 %v1805_v7  ;;  %1274 = vmatprep.subr.bf16.mxu0 %v1806_v8  ;;  %v1814_v13 = vld [vmem:[#allocation5 + $0x284] ss:$16 sps:$4 sm:$0xff]   ;;  %v1817_v15 = vld [vmem:[#allocation5 + $0x280] ss:$16 sps:$4 sm:$0xff]   ;;  %v1899_v7 = vld [vmem:[#allocation5 + $0xe8] ss:$16 sps:$4 sm:$0xff]  }
  0x2f   :  { %1317 = vmatprep.subr.bf16.mxu1 %v1808_v9  ;;  %v1818_v16 = vld [vmem:[#allocation5 + $0x64] ss:$16 sps:$4 sm:$0xff]   ;;  %v1822_v18 = vld [vmem:[#allocation5 + $0x60] ss:$16 sps:$4 sm:$0xff]   ;;  %v1907_v9 = vld [vmem:[#allocation5 + $0xcc] ss:$16 sps:$4 sm:$0xff]  }
  0x30   :  { %v1820_v17 = vld [vmem:[#allocation5 + $0x264] ss:$16 sps:$4 sm:$0xff]   ;;  %v1823_v19 = vld [vmem:[#allocation5 + $0x260] ss:$16 sps:$4 sm:$0xff]  }
  0x31   :  { %1275 = vmatpush1.bf16.msra.mxu0 %v1810_v10  ;;  %v1824_v20 = vld [vmem:[#allocation5 + $0x44] ss:$16 sps:$4 sm:$0xff]   ;;  %v1828_v22 = vld [vmem:[#allocation5 + $0x40] ss:$16 sps:$4 sm:$0xff]  }
  0x32   :  { %1318 = vmatpush1.bf16.msra.mxu1 %v1811_v11  ;;  %1276 = vmatprep.subr.bf16.mxu0 %v1812_v12  ;;  %v1826_v21 = vld [vmem:[#allocation5 + $0x244] ss:$16 sps:$4 sm:$0xff]   ;;  %v1829_v23 = vld [vmem:[#allocation5 + $0x240] ss:$16 sps:$4 sm:$0xff]   ;;  %v1905_v11 = vld [vmem:[#allocation5 + $0xc8] ss:$16 sps:$4 sm:$0xff]  }
  0x33   :  { %1319 = vmatprep.subr.bf16.mxu1 %v1814_v13  ;;  %v1830_v24 = vld [vmem:[#allocation5 + $0x24] ss:$16 sps:$4 sm:$0xff]   ;;  %v1834_v26 = vld [vmem:[#allocation5 + $0x20] ss:$16 sps:$4 sm:$0xff]   ;;  %v1913_v13 = vld [vmem:[#allocation5 + $0xac] ss:$16 sps:$4 sm:$0xff]  }
  0x34   :  { %v1832_v25 = vld [vmem:[#allocation5 + $0x224] ss:$16 sps:$4 sm:$0xff]   ;;  %v1835_v27 = vld [vmem:[#allocation5 + $0x220] ss:$16 sps:$4 sm:$0xff]  }
  0x35   :  { %1277 = vmatpush1.bf16.msra.mxu0 %v1816_v14  ;;  %v1836_v28 = vld [vmem:[#allocation5 + $0x4] ss:$16 sps:$4 sm:$0xff]   ;;  %v1840_v30 = vld [vmem:[#allocation5] ss:$16 sps:$4 sm:$0xff]  }
  0x36   :  { %1320 = vmatpush1.bf16.msra.mxu1 %v1817_v15  ;;  %1278 = vmatprep.subr.bf16.mxu0 %v1818_v16  ;;  %v1838_v29 = vld [vmem:[#allocation5 + $0x204] ss:$16 sps:$4 sm:$0xff]   ;;  %v1841_v31 = vld [vmem:[#allocation5 + $0x200] ss:$16 sps:$4 sm:$0xff]   ;;  %v1911_v15 = vld [vmem:[#allocation5 + $0xa8] ss:$16 sps:$4 sm:$0xff]  }
  0x37   :  { %1321 = vmatprep.subr.bf16.mxu1 %v1820_v17  ;;  %v1842_v32 = vld [vmem:[#allocation5 + $0x1e4] ss:$16 sps:$4 sm:$0xff]   ;;  %v1846_v34 = vld [vmem:[#allocation5 + $0x1e0] ss:$16 sps:$4 sm:$0xff]   ;;  %v1919_v17 = vld [vmem:[#allocation5 + $0x8c] ss:$16 sps:$4 sm:$0xff]  }
  0x38   :  { %v1844_v33 = vld [vmem:[#allocation5 + $0x3e4] ss:$16 sps:$4 sm:$0xff]   ;;  %v1847_v35 = vld [vmem:[#allocation5 + $0x3e0] ss:$16 sps:$4 sm:$0xff]  }
  0x39   :  { %1279 = vmatpush1.bf16.msra.mxu0 %v1822_v18  ;;  %v1848_v36 = vld [vmem:[#allocation5 + $0x1c4] ss:$16 sps:$4 sm:$0xff]   ;;  %v1852_v38 = vld [vmem:[#allocation5 + $0x1c0] ss:$16 sps:$4 sm:$0xff]  }
  0x3a   :  { %1322 = vmatpush1.bf16.msra.mxu1 %v1823_v19  ;;  %1280 = vmatprep.subr.bf16.mxu0 %v1824_v20  ;;  %v1850_v37 = vld [vmem:[#allocation5 + $0x3c4] ss:$16 sps:$4 sm:$0xff]   ;;  %v1853_v39 = vld [vmem:[#allocation5 + $0x3c0] ss:$16 sps:$4 sm:$0xff]   ;;  %v1917_v19 = vld [vmem:[#allocation5 + $0x88] ss:$16 sps:$4 sm:$0xff]  }
  0x3b   :  { %1323 = vmatprep.subr.bf16.mxu1 %v1826_v21  ;;  %v1854_v40 = vld [vmem:[#allocation5 + $0x1a4] ss:$16 sps:$4 sm:$0xff]   ;;  %v1858_v42 = vld [vmem:[#allocation5 + $0x1a0] ss:$16 sps:$4 sm:$0xff]   ;;  %v1925_v21 = vld [vmem:[#allocation5 + $0x6c] ss:$16 sps:$4 sm:$0xff]  }
  0x3c   :  { %v1856_v41 = vld [vmem:[#allocation5 + $0x3a4] ss:$16 sps:$4 sm:$0xff]   ;;  %v1859_v43 = vld [vmem:[#allocation5 + $0x3a0] ss:$16 sps:$4 sm:$0xff]  }
  0x3d   :  { %1281 = vmatpush1.bf16.msra.mxu0 %v1828_v22  ;;  %v1860_v44 = vld [vmem:[#allocation5 + $0x184] ss:$16 sps:$4 sm:$0xff]   ;;  %v1864_v46 = vld [vmem:[#allocation5 + $0x180] ss:$16 sps:$4 sm:$0xff]  }
  0x3e   :  { %1324 = vmatpush1.bf16.msra.mxu1 %v1829_v23  ;;  %1282 = vmatprep.subr.bf16.mxu0 %v1830_v24  ;;  %v1862_v45 = vld [vmem:[#allocation5 + $0x384] ss:$16 sps:$4 sm:$0xff]   ;;  %v1865_v47 = vld [vmem:[#allocation5 + $0x380] ss:$16 sps:$4 sm:$0xff]   ;;  %v1923_v23 = vld [vmem:[#allocation5 + $0x68] ss:$16 sps:$4 sm:$0xff]  }
  0x3f   :  { %1325 = vmatprep.subr.bf16.mxu1 %v1832_v25  ;;  %v1866_v48 = vld [vmem:[#allocation5 + $0x164] ss:$16 sps:$4 sm:$0xff]   ;;  %v1870_v52 = vld [vmem:[#allocation5 + $0x160] ss:$16 sps:$4 sm:$0xff]   ;;  %v1931_v25 = vld [vmem:[#allocation5 + $0x4c] ss:$16 sps:$4 sm:$0xff]  }
  0x40   :  { %v1892_v49 = vld [vmem:[#allocation3 + $0x4] ss:$24 sps:$4 sm:$0xff]   ;;  %v1871_v53 = vld [vmem:[#allocation5 + $0x360] ss:$16 sps:$4 sm:$0xff]  }
  0x41   :  { %1283 = vmatpush1.bf16.msra.mxu0 %v1834_v26  ;;  %v1868_v50 = vld [vmem:[#allocation5 + $0x364] ss:$16 sps:$4 sm:$0xff]   ;;  %1302 = vmatprep.mubr.bf16.mxu0 %v1892_v49  ;;  %v1876_v56 = vld [vmem:[#allocation5 + $0x140] ss:$16 sps:$4 sm:$0xff]  }
  0x42   :  { %1326 = vmatpush1.bf16.msra.mxu1 %v1835_v27  ;;  %1284 = vmatprep.subr.bf16.mxu0 %v1836_v28  ;;  %v2201_v51 = vld [vmem:[#allocation3 + $0xc] ss:$24 sps:$4 sm:$0xff]   ;;  %v1877_v57 = vld [vmem:[#allocation5 + $0x340] ss:$16 sps:$4 sm:$0xff]   ;;  %v1929_v27 = vld [vmem:[#allocation5 + $0x48] ss:$16 sps:$4 sm:$0xff]  }
  0x43   :  { %1327 = vmatprep.subr.bf16.mxu1 %v1838_v29  ;;  %1345 = vmatprep.mubr.bf16.mxu1 %v2201_v51  ;;  %v1872_v54 = vld [vmem:[#allocation5 + $0x144] ss:$16 sps:$4 sm:$0xff]   ;;  %v1882_v60 = vld [vmem:[#allocation5 + $0x120] ss:$16 sps:$4 sm:$0xff]   ;;  %v1937_v29 = vld [vmem:[#allocation5 + $0x2c] ss:$16 sps:$4 sm:$0xff]  }
  0x44   :  { %v1874_v55 = vld [vmem:[#allocation5 + $0x344] ss:$16 sps:$4 sm:$0xff]   ;;  %v1883_v61 = vld [vmem:[#allocation5 + $0x320] ss:$16 sps:$4 sm:$0xff]  }
  0x45   :  { %1285 = vmatpush1.bf16.msra.mxu0 %v1840_v30  ;;  %v1878_v58 = vld [vmem:[#allocation5 + $0x124] ss:$16 sps:$4 sm:$0xff]   ;;  %v1888_v0 = vld [vmem:[#allocation5 + $0x100] ss:$16 sps:$4 sm:$0xff]  }
  0x46   :  { %1328 = vmatpush1.bf16.msra.mxu1 %v1841_v31  ;;  %1286 = vmatprep.subr.bf16.mxu0 %v1842_v32  ;;  %v1880_v59 = vld [vmem:[#allocation5 + $0x324] ss:$16 sps:$4 sm:$0xff]   ;;  %v1889_v1 = vld [vmem:[#allocation5 + $0x300] ss:$16 sps:$4 sm:$0xff]   ;;  %v1935_v31 = vld [vmem:[#allocation5 + $0x28] ss:$16 sps:$4 sm:$0xff]  }
  0x47   :  { %1329 = vmatprep.subr.bf16.mxu1 %v1844_v33  ;;  %v1884_v62 = vld [vmem:[#allocation5 + $0x104] ss:$16 sps:$4 sm:$0xff]   ;;  %v2204_v4 = vld [vmem:[#allocation3] ss:$24 sps:$4 sm:$0xff]   ;;  %v1943_v33 = vld [vmem:[#allocation5 + $0xc] ss:$16 sps:$4 sm:$0xff]  }
  0x48   :  { %v1886_v63 = vld [vmem:[#allocation5 + $0x304] ss:$16 sps:$4 sm:$0xff]   ;;  %v2206_v5 = vld [vmem:[#allocation3 + $0x8] ss:$24 sps:$4 sm:$0xff]  }
  0x49   :  { %1287 = vmatpush2.bf16.msra.mxu0 %v1846_v34  ;;  %v1898_v2 = vld [vmem:[#allocation5 + $0x4e4] ss:$16 sps:$4 sm:$0xff]   ;;  %v1896_v6 = vld [vmem:[#allocation5 + $0x4e0] ss:$16 sps:$4 sm:$0xff]  }
  0x4a   :  { %1330 = vmatpush2.bf16.msra.mxu1 %v1847_v35  ;;  %1288 = vmatprep.subr.bf16.mxu0 %v1848_v36  ;;  %v1904_v8 = vld [vmem:[#allocation5 + $0x4c4] ss:$16 sps:$4 sm:$0xff]   ;;  %v1902_v10 = vld [vmem:[#allocation5 + $0x4c0] ss:$16 sps:$4 sm:$0xff]   ;;  %v1941_v36 = vld [vmem:[#allocation5 + $0x8] ss:$16 sps:$4 sm:$0xff]  }
  0x4b   :  { %1331 = vmatprep.subr.bf16.mxu1 %v1850_v37  ;;  %v1910_v12 = vld [vmem:[#allocation5 + $0x4a4] ss:$16 sps:$4 sm:$0xff]   ;;  %v1908_v14 = vld [vmem:[#allocation5 + $0x4a0] ss:$16 sps:$4 sm:$0xff]  }
  0x4c   :  { %v1916_v16 = vld [vmem:[#allocation5 + $0x484] ss:$16 sps:$4 sm:$0xff]   ;;  %v1914_v18 = vld [vmem:[#allocation5 + $0x480] ss:$16 sps:$4 sm:$0xff]  }
  0x4d   :  { %1289 = vmatpush2.bf16.msra.mxu0 %v1852_v38  ;;  %v1922_v20 = vld [vmem:[#allocation5 + $0x464] ss:$16 sps:$4 sm:$0xff]   ;;  %v1920_v22 = vld [vmem:[#allocation5 + $0x460] ss:$16 sps:$4 sm:$0xff]   ;;  %v1949_v38 = vld [vmem:[#allocation5 + $0x1ec] ss:$16 sps:$4 sm:$0xff]  }
  0x4e   :  { %1332 = vmatpush2.bf16.msra.mxu1 %v1853_v39  ;;  %1290 = vmatprep.subr.bf16.mxu0 %v1854_v40  ;;  %v1928_v24 = vld [vmem:[#allocation5 + $0x444] ss:$16 sps:$4 sm:$0xff]   ;;  %v1926_v26 = vld [vmem:[#allocation5 + $0x440] ss:$16 sps:$4 sm:$0xff]   ;;  %v1947_v40 = vld [vmem:[#allocation5 + $0x1e8] ss:$16 sps:$4 sm:$0xff]  }
  0x4f   :  { %1333 = vmatprep.subr.bf16.mxu1 %v1856_v41  ;;  %v1934_v28 = vld [vmem:[#allocation5 + $0x424] ss:$16 sps:$4 sm:$0xff]   ;;  %v1932_v30 = vld [vmem:[#allocation5 + $0x420] ss:$16 sps:$4 sm:$0xff]  }
  0x50   :  { %v1940_v32 = vld [vmem:[#allocation5 + $0x404] ss:$16 sps:$4 sm:$0xff]   ;;  %v1938_v35 = vld [vmem:[#allocation5 + $0x400] ss:$16 sps:$4 sm:$0xff]  }
  0x51   :  { %1291 = vmatpush2.bf16.msra.mxu0 %v1858_v42  ;;  %v2210_v34 = vld [vmem:[#allocation3 + $0x14] ss:$24 sps:$4 sm:$0xff]   ;;  %v1944_v39 = vld [vmem:[#allocation5 + $0x5e0] ss:$16 sps:$4 sm:$0xff]  }
  0x52   :  { %1334 = vmatpush2.bf16.msra.mxu1 %v1859_v43  ;;  %1292 = vmatprep.subr.bf16.mxu0 %v1860_v44  ;;  %v1946_v37 = vld [vmem:[#allocation5 + $0x5e4] ss:$16 sps:$4 sm:$0xff]   ;;  %v1955_v42 = vld [vmem:[#allocation5 + $0x1cc] ss:$16 sps:$4 sm:$0xff]   ;;  %v1950_v43 = vld [vmem:[#allocation5 + $0x5c0] ss:$16 sps:$4 sm:$0xff]  }
  0x53   :  { %1335 = vmatprep.subr.bf16.mxu1 %v1862_v45  ;;  %v1952_v41 = vld [vmem:[#allocation5 + $0x5c4] ss:$16 sps:$4 sm:$0xff]   ;;  %v1953_v44 = vld [vmem:[#allocation5 + $0x1c8] ss:$16 sps:$4 sm:$0xff]  }
  0x54   :  { %v1958_v45 = vld [vmem:[#allocation5 + $0x5a4] ss:$16 sps:$4 sm:$0xff]  }
  0x55   :  { %1293 = vmatpush2.bf16.msra.mxu0 %v1864_v46  ;;  %v1961_v46 = vld [vmem:[#allocation5 + $0x1ac] ss:$16 sps:$4 sm:$0xff]  }
  0x56   :  { %1336 = vmatpush2.bf16.msra.mxu1 %v1865_v47  ;;  %1294 = vmatprep.subr.bf16.mxu0 %v1866_v48  ;;  %v1956_v47 = vld [vmem:[#allocation5 + $0x5a0] ss:$16 sps:$4 sm:$0xff]   ;;  %v1959_v48 = vld [vmem:[#allocation5 + $0x1a8] ss:$16 sps:$4 sm:$0xff]  }
  0x57   :  { %1337 = vmatprep.subr.bf16.mxu1 %v1868_v50  ;;  %v1967_v50 = vld [vmem:[#allocation5 + $0x18c] ss:$16 sps:$4 sm:$0xff]  }
  0x59   :  { %1295 = vmatpush2.bf16.msra.mxu0 %v1870_v52  ;;  %v1962_v52 = vld [vmem:[#allocation5 + $0x580] ss:$16 sps:$4 sm:$0xff]  }
  0x5a   :  { %1338 = vmatpush2.bf16.msra.mxu1 %v1871_v53  ;;  %1296 = vmatprep.subr.bf16.mxu0 %v1872_v54  ;;  %v1965_v53 = vld [vmem:[#allocation5 + $0x188] ss:$16 sps:$4 sm:$0xff]   ;;  %v1970_v54 = vld [vmem:[#allocation5 + $0x564] ss:$16 sps:$4 sm:$0xff]  }
  0x5b   :  { %1339 = vmatprep.subr.bf16.mxu1 %v1874_v55  ;;  %v1973_v55 = vld [vmem:[#allocation5 + $0x16c] ss:$16 sps:$4 sm:$0xff]  }
  0x5d   :  { %1297 = vmatpush2.bf16.msra.mxu0 %v1876_v56  ;;  %v1968_v56 = vld [vmem:[#allocation5 + $0x560] ss:$16 sps:$4 sm:$0xff]  }
  0x5e   :  { %1340 = vmatpush2.bf16.msra.mxu1 %v1877_v57  ;;  %1298 = vmatprep.subr.bf16.mxu0 %v1878_v58  ;;  %v1971_v57 = vld [vmem:[#allocation5 + $0x168] ss:$16 sps:$4 sm:$0xff]   ;;  %v1976_v58 = vld [vmem:[#allocation5 + $0x544] ss:$16 sps:$4 sm:$0xff]  }
  0x5f   :  { %1341 = vmatprep.subr.bf16.mxu1 %v1880_v59  ;;  %v1979_v59 = vld [vmem:[#allocation5 + $0x14c] ss:$16 sps:$4 sm:$0xff]  }
  0x61   :  { %1299 = vmatpush2.bf16.msra.mxu0 %v1882_v60  ;;  %v1974_v60 = vld [vmem:[#allocation5 + $0x540] ss:$16 sps:$4 sm:$0xff]  }
  0x62   :  { %1342 = vmatpush2.bf16.msra.mxu1 %v1883_v61  ;;  %1300 = vmatprep.subr.bf16.mxu0 %v1884_v62  ;;  %v1977_v61 = vld [vmem:[#allocation5 + $0x148] ss:$16 sps:$4 sm:$0xff]   ;;  %v1982_v62 = vld [vmem:[#allocation5 + $0x524] ss:$16 sps:$4 sm:$0xff]  }
  0x63   :  { %1343 = vmatprep.subr.bf16.mxu1 %v1886_v63  ;;  %v1985_v63 = vld [vmem:[#allocation5 + $0x12c] ss:$16 sps:$4 sm:$0xff]  }
  0x65   :  { %1301 = vmatpush2.bf16.msra.mxu0 %v1888_v0  ;;  %v1980_v0 = vld [vmem:[#allocation5 + $0x520] ss:$16 sps:$4 sm:$0xff]  }
  0x66   :  { %1344 = vmatpush2.bf16.msra.mxu1 %v1889_v1  ;;  %1356 = vmatprep.subr.bf16.mxu0 %v1898_v2  ;;  %v1983_v1 = vld [vmem:[#allocation5 + $0x128] ss:$16 sps:$4 sm:$0xff]   ;;  %v1988_v2 = vld [vmem:[#allocation5 + $0x504] ss:$16 sps:$4 sm:$0xff]  }
  0x67   :  { %1399 = vmatprep.subr.bf16.mxu1 %v1901_v3  ;;  %v1991_v3 = vld [vmem:[#allocation5 + $0x10c] ss:$16 sps:$4 sm:$0xff]  }
  0x68   :  { %1303 = vmatmul.mubr.bf16.vlgmr.msra.gmra.mxu0 %v2204_v4 }
  0x69   :  { %1346 = vmatmul.mubr.bf16.vlgmr.msra.gmra.mxu1 %v2206_v5  ;;  %1357 = vmatpush1.bf16.msra.mxu0 %v1896_v6  ;;  %v1986_v6 = vld [vmem:[#allocation5 + $0x500] ss:$16 sps:$4 sm:$0xff]  }
  0x6a   :  { %1400 = vmatpush1.bf16.msra.mxu1 %v1899_v7  ;;  %1358 = vmatprep.subr.bf16.mxu0 %v1904_v8  ;;  %v1989_v7 = vld [vmem:[#allocation5 + $0x108] ss:$16 sps:$4 sm:$0xff]   ;;  %v1997_v8 = vld [vmem:[#allocation5 + $0x2ec] ss:$16 sps:$4 sm:$0xff]  }
  0x6b   :  { %1401 = vmatprep.subr.bf16.mxu1 %v1907_v9  ;;  %1431 = vmatprep.mubr.bf16.mxu1 %v1892_v49  ;;  %v1964_v49 = vld [vmem:[#allocation5 + $0x584] ss:$16 sps:$4 sm:$0xff]   ;;  %v2000_v9 = vld [vmem:[#allocation5 + $0x4ec] ss:$16 sps:$4 sm:$0xff]  }
  0x6c   :  { %1388 = vmatprep.mubr.bf16.mxu0 %v2210_v34 }
  0x6d   :  { %1359 = vmatpush1.bf16.msra.mxu0 %v1902_v10  ;;  %v2213_v10 = vld [vmem:[#allocation3 + $0x10] ss:$24 sps:$4 sm:$0xff]  }
  0x6e   :  { %1402 = vmatpush1.bf16.msra.mxu1 %v1905_v11  ;;  %1360 = vmatprep.subr.bf16.mxu0 %v1910_v12  ;;  %v1995_v11 = vld [vmem:[#allocation5 + $0x2e8] ss:$16 sps:$4 sm:$0xff]  }
  0x6f   :  { %1403 = vmatprep.subr.bf16.mxu1 %v1913_v13  ;;  %v1998_v12 = vld [vmem:[#allocation5 + $0x4e8] ss:$16 sps:$4 sm:$0xff]   ;;  %v2003_v13 = vld [vmem:[#allocation5 + $0x2cc] ss:$16 sps:$4 sm:$0xff]  }
  0x71   :  { %1361 = vmatpush1.bf16.msra.mxu0 %v1908_v14  ;;  %v2006_v14 = vld [vmem:[#allocation5 + $0x4cc] ss:$16 sps:$4 sm:$0xff]  }
  0x72   :  { %1404 = vmatpush1.bf16.msra.mxu1 %v1911_v15  ;;  %1362 = vmatprep.subr.bf16.mxu0 %v1916_v16  ;;  %v2001_v15 = vld [vmem:[#allocation5 + $0x2c8] ss:$16 sps:$4 sm:$0xff]  }
  0x73   :  { %1405 = vmatprep.subr.bf16.mxu1 %v1919_v17  ;;  %v2004_v16 = vld [vmem:[#allocation5 + $0x4c8] ss:$16 sps:$4 sm:$0xff]   ;;  %v2009_v17 = vld [vmem:[#allocation5 + $0x2ac] ss:$16 sps:$4 sm:$0xff]  }
  0x75   :  { %1363 = vmatpush1.bf16.msra.mxu0 %v1914_v18  ;;  %v2012_v18 = vld [vmem:[#allocation5 + $0x4ac] ss:$16 sps:$4 sm:$0xff]  }
  0x76   :  { %1406 = vmatpush1.bf16.msra.mxu1 %v1917_v19  ;;  %1364 = vmatprep.subr.bf16.mxu0 %v1922_v20  ;;  %v2007_v19 = vld [vmem:[#allocation5 + $0x2a8] ss:$16 sps:$4 sm:$0xff]  }
  0x77   :  { %1407 = vmatprep.subr.bf16.mxu1 %v1925_v21  ;;  %v2010_v20 = vld [vmem:[#allocation5 + $0x4a8] ss:$16 sps:$4 sm:$0xff]   ;;  %v2015_v21 = vld [vmem:[#allocation5 + $0x28c] ss:$16 sps:$4 sm:$0xff]  }
  0x79   :  { %1365 = vmatpush1.bf16.msra.mxu0 %v1920_v22  ;;  %v2013_v22 = vld [vmem:[#allocation5 + $0x288] ss:$16 sps:$4 sm:$0xff]  }
  0x7a   :  { %1408 = vmatpush1.bf16.msra.mxu1 %v1923_v23  ;;  %1366 = vmatprep.subr.bf16.mxu0 %v1928_v24  ;;  %v2016_v23 = vld [vmem:[#allocation5 + $0x488] ss:$16 sps:$4 sm:$0xff]   ;;  %v2021_v24 = vld [vmem:[#allocation5 + $0x26c] ss:$16 sps:$4 sm:$0xff]  }
  0x7b   :  { %1409 = vmatprep.subr.bf16.mxu1 %v1931_v25  ;;  %v2024_v25 = vld [vmem:[#allocation5 + $0x46c] ss:$16 sps:$4 sm:$0xff]  }
  0x7d   :  { %1367 = vmatpush1.bf16.msra.mxu0 %v1926_v26  ;;  %v2022_v26 = vld [vmem:[#allocation5 + $0x468] ss:$16 sps:$4 sm:$0xff]  }
  0x7e   :  { %1410 = vmatpush1.bf16.msra.mxu1 %v1929_v27  ;;  %1368 = vmatprep.subr.bf16.mxu0 %v1934_v28  ;;  %v2027_v27 = vld [vmem:[#allocation5 + $0x24c] ss:$16 sps:$4 sm:$0xff]  }
  0x7f   :  { %1411 = vmatprep.subr.bf16.mxu1 %v1937_v29  ;;  %v2030_v28 = vld [vmem:[#allocation5 + $0x44c] ss:$16 sps:$4 sm:$0xff]   ;;  %v2025_v29 = vld [vmem:[#allocation5 + $0x248] ss:$16 sps:$4 sm:$0xff]  }
  0x81   :  { %1369 = vmatpush1.bf16.msra.mxu0 %v1932_v30  ;;  %v2028_v30 = vld [vmem:[#allocation5 + $0x448] ss:$16 sps:$4 sm:$0xff]  }
  0x82   :  { %1412 = vmatpush1.bf16.msra.mxu1 %v1935_v31  ;;  %1370 = vmatprep.subr.bf16.mxu0 %v1940_v32  ;;  %v2033_v31 = vld [vmem:[#allocation5 + $0x22c] ss:$16 sps:$4 sm:$0xff]  }
  0x83   :  { %1413 = vmatprep.subr.bf16.mxu1 %v1943_v33  ;;  %v2036_v32 = vld [vmem:[#allocation5 + $0x42c] ss:$16 sps:$4 sm:$0xff]   ;;  %v2031_v33 = vld [vmem:[#allocation5 + $0x228] ss:$16 sps:$4 sm:$0xff]  }
  0x85   :  { %1371 = vmatpush1.bf16.msra.mxu0 %v1938_v35  ;;  %v2039_v35 = vld [vmem:[#allocation5 + $0x20c] ss:$16 sps:$4 sm:$0xff]  }
  0x86   :  { %1414 = vmatpush1.bf16.msra.mxu1 %v1941_v36  ;;  %1372 = vmatprep.subr.bf16.mxu0 %v1946_v37  ;;  %v2042_v36 = vld [vmem:[#allocation5 + $0x40c] ss:$16 sps:$4 sm:$0xff]   ;;  %v2037_v37 = vld [vmem:[#allocation5 + $0x208] ss:$16 sps:$4 sm:$0xff]  }
  0x87   :  { %1415 = vmatprep.subr.bf16.mxu1 %v1949_v38  ;;  %v2040_v38 = vld [vmem:[#allocation5 + $0x408] ss:$16 sps:$4 sm:$0xff]  }
  0x89   :  { %1373 = vmatpush2.bf16.msra.mxu0 %v1944_v39  ;;  %v2045_v39 = vld [vmem:[#allocation5 + $0x3ec] ss:$16 sps:$4 sm:$0xff]  }
  0x8a   :  { %1416 = vmatpush2.bf16.msra.mxu1 %v1947_v40  ;;  %1374 = vmatprep.subr.bf16.mxu0 %v1952_v41  ;;  %v2048_v40 = vld [vmem:[#allocation5 + $0x5ec] ss:$16 sps:$4 sm:$0xff]   ;;  %v2043_v41 = vld [vmem:[#allocation5 + $0x3e8] ss:$16 sps:$4 sm:$0xff]  }
  0x8b   :  { %1417 = vmatprep.subr.bf16.mxu1 %v1955_v42  ;;  %v2046_v42 = vld [vmem:[#allocation5 + $0x5e8] ss:$16 sps:$4 sm:$0xff]  }
  0x8d   :  { %1375 = vmatpush2.bf16.msra.mxu0 %v1950_v43  ;;  %v2051_v43 = vld [vmem:[#allocation5 + $0x3cc] ss:$16 sps:$4 sm:$0xff]  }
  0x8e   :  { %1418 = vmatpush2.bf16.msra.mxu1 %v1953_v44  ;;  %1376 = vmatprep.subr.bf16.mxu0 %v1958_v45  ;;  %v2054_v44 = vld [vmem:[#allocation5 + $0x5cc] ss:$16 sps:$4 sm:$0xff]   ;;  %v2049_v45 = vld [vmem:[#allocation5 + $0x3c8] ss:$16 sps:$4 sm:$0xff]  }
  0x8f   :  { %1419 = vmatprep.subr.bf16.mxu1 %v1961_v46  ;;  %v2052_v46 = vld [vmem:[#allocation5 + $0x5c8] ss:$16 sps:$4 sm:$0xff]  }
  0x91   :  { %1377 = vmatpush2.bf16.msra.mxu0 %v1956_v47  ;;  %v2057_v47 = vld [vmem:[#allocation5 + $0x3ac] ss:$16 sps:$4 sm:$0xff]  }
  0x92   :  { %1420 = vmatpush2.bf16.msra.mxu1 %v1959_v48  ;;  %1378 = vmatprep.subr.bf16.mxu0 %v1964_v49  ;;  %v2060_v48 = vld [vmem:[#allocation5 + $0x5ac] ss:$16 sps:$4 sm:$0xff]   ;;  %v2055_v49 = vld [vmem:[#allocation5 + $0x3a8] ss:$16 sps:$4 sm:$0xff]  }
  0x93   :  { %1421 = vmatprep.subr.bf16.mxu1 %v1967_v50  ;;  %v2058_v50 = vld [vmem:[#allocation5 + $0x5a8] ss:$16 sps:$4 sm:$0xff]  }
  0x95   :  { %1379 = vmatpush2.bf16.msra.mxu0 %v1962_v52  ;;  %v2063_v52 = vld [vmem:[#allocation5 + $0x38c] ss:$16 sps:$4 sm:$0xff]  }
  0x96   :  { %1422 = vmatpush2.bf16.msra.mxu1 %v1965_v53  ;;  %1380 = vmatprep.subr.bf16.mxu0 %v1970_v54  ;;  %v2066_v53 = vld [vmem:[#allocation5 + $0x58c] ss:$16 sps:$4 sm:$0xff]   ;;  %v2061_v54 = vld [vmem:[#allocation5 + $0x388] ss:$16 sps:$4 sm:$0xff]  }
  0x97   :  { %1423 = vmatprep.subr.bf16.mxu1 %v1973_v55  ;;  %v2064_v55 = vld [vmem:[#allocation5 + $0x588] ss:$16 sps:$4 sm:$0xff]  }
  0x99   :  { %1381 = vmatpush2.bf16.msra.mxu0 %v1968_v56  ;;  %v2069_v56 = vld [vmem:[#allocation5 + $0x36c] ss:$16 sps:$4 sm:$0xff]  }
  0x9a   :  { %1424 = vmatpush2.bf16.msra.mxu1 %v1971_v57  ;;  %1382 = vmatprep.subr.bf16.mxu0 %v1976_v58  ;;  %v2072_v57 = vld [vmem:[#allocation5 + $0x56c] ss:$16 sps:$4 sm:$0xff]   ;;  %v2067_v58 = vld [vmem:[#allocation5 + $0x368] ss:$16 sps:$4 sm:$0xff]  }
  0x9b   :  { %1425 = vmatprep.subr.bf16.mxu1 %v1979_v59  ;;  %v2070_v59 = vld [vmem:[#allocation5 + $0x568] ss:$16 sps:$4 sm:$0xff]  }
  0x9d   :  { %1383 = vmatpush2.bf16.msra.mxu0 %v1974_v60  ;;  %v2075_v60 = vld [vmem:[#allocation5 + $0x34c] ss:$16 sps:$4 sm:$0xff]  }
  0x9e   :  { %1426 = vmatpush2.bf16.msra.mxu1 %v1977_v61  ;;  %1384 = vmatprep.subr.bf16.mxu0 %v1982_v62  ;;  %v2078_v61 = vld [vmem:[#allocation5 + $0x54c] ss:$16 sps:$4 sm:$0xff]   ;;  %v2073_v62 = vld [vmem:[#allocation5 + $0x348] ss:$16 sps:$4 sm:$0xff]  }
  0x9f   :  { %1427 = vmatprep.subr.bf16.mxu1 %v1985_v63  ;;  %v2076_v63 = vld [vmem:[#allocation5 + $0x548] ss:$16 sps:$4 sm:$0xff]  }
  0xa1   :  { %1385 = vmatpush2.bf16.msra.mxu0 %v1980_v0  ;;  %v2081_v0 = vld [vmem:[#allocation5 + $0x32c] ss:$16 sps:$4 sm:$0xff]  }
  0xa2   :  { %1428 = vmatpush2.bf16.msra.mxu1 %v1983_v1  ;;  %1386 = vmatprep.subr.bf16.mxu0 %v1988_v2  ;;  %v2084_v1 = vld [vmem:[#allocation5 + $0x52c] ss:$16 sps:$4 sm:$0xff]   ;;  %v2079_v2 = vld [vmem:[#allocation5 + $0x328] ss:$16 sps:$4 sm:$0xff]  }
  0xa3   :  { %1429 = vmatprep.subr.bf16.mxu1 %v1991_v3  ;;  %v2082_v3 = vld [vmem:[#allocation5 + $0x528] ss:$16 sps:$4 sm:$0xff]  }
  0xa5   :  { %1387 = vmatpush2.bf16.msra.mxu0 %v1986_v6  ;;  %v2087_v6 = vld [vmem:[#allocation5 + $0x30c] ss:$16 sps:$4 sm:$0xff]  }
  0xa6   :  { %1430 = vmatpush2.bf16.msra.mxu1 %v1989_v7  ;;  %1442 = vmatprep.subr.bf16.mxu0 %v1997_v8  ;;  %v2090_v7 = vld [vmem:[#allocation5 + $0x50c] ss:$16 sps:$4 sm:$0xff]   ;;  %v2085_v8 = vld [vmem:[#allocation5 + $0x308] ss:$16 sps:$4 sm:$0xff]  }
  0xa7   :  { %1485 = vmatprep.subr.bf16.mxu1 %v2000_v9  ;;  %v2088_v9 = vld [vmem:[#allocation5 + $0x508] ss:$16 sps:$4 sm:$0xff]  }
  0xa8   :  { %1389 = vmatmul.mubr.bf16.vlgmr.msra.gmra.mxu0 %v2213_v10 }
  0xa9   :  { %1432 = vmatmul.mubr.bf16.vlgmr.msra.gmra.mxu1 %v2204_v4  ;;  %1443 = vmatpush1.bf16.msra.mxu0 %v1995_v11  ;;  %v2018_v4 = vld [vmem:[#allocation5 + $0x48c] ss:$16 sps:$4 sm:$0xff]  }
  0xaa   :  { %1486 = vmatpush1.bf16.msra.mxu1 %v1998_v12  ;;  %1444 = vmatprep.subr.bf16.mxu0 %v2003_v13  ;;  %v260_v12 = vlaneseq }
  0xab   :  { %1487 = vmatprep.subr.bf16.mxu1 %v2006_v14  ;;  %1474 = vmatprep.mubr.bf16.mxu0 %v2201_v51  ;;  %v2019_v51 = vld [vmem:[#allocation5 + $0x268] ss:$16 sps:$4 sm:$0xff]  }
  0xac   :  { %1517 = vmatprep.mubr.bf16.mxu1 %v2210_v34  ;;  %v2034_v34 = vld [vmem:[#allocation5 + $0x428] ss:$16 sps:$4 sm:$0xff]  }
  0xad   :  { %1445 = vmatpush1.bf16.msra.mxu0 %v2001_v15  ;;  %v261_v15 = vshrl.u32 %v260_v12, 7 }
  0xae   :  { %1488 = vmatpush1.bf16.msra.mxu1 %v2004_v16  ;;  %1446 = vmatprep.subr.bf16.mxu0 %v2009_v17 }
  0xaf   :  { %1489 = vmatprep.subr.bf16.mxu1 %v2012_v18  ;;  %v266_v18 = vsub.s32 1, %v261_v15 }
  0xb1   :  { %1447 = vmatpush1.bf16.msra.mxu0 %v2007_v19 }
  0xb2   :  { %1490 = vmatpush1.bf16.msra.mxu1 %v2010_v20  ;;  %1448 = vmatprep.subr.bf16.mxu0 %v2015_v21  ;;  %v258_v20 = vld [vmem:[%s2235_s2] sm:$0xf] }
  0xb3   :  { %1491 = vmatprep.subr.bf16.mxu1 %v2018_v4  ;;  %v262_v4 = vsub.s32 0, %v261_v15 }
  0xb5   :  { %1449 = vmatpush1.bf16.msra.mxu0 %v2013_v22 }
  0xb6   :  { %1492 = vmatpush1.bf16.msra.mxu1 %v2016_v23  ;;  %1450 = vmatprep.subr.bf16.mxu0 %v2021_v24  ;;  %v267_v23 = vrot.slane %v258_v20, %v266_v18  ;;  %v263_v24 = vrot.slane %v258_v20, %v262_v4 }
  0xb7   :  { %1493 = vmatprep.subr.bf16.mxu1 %v2024_v25 }
  0xb9   :  { %1451 = vmatpush1.bf16.msra.mxu0 %v2019_v51 }
  0xba   :  { %1494 = vmatpush1.bf16.msra.mxu1 %v2022_v26  ;;  %1452 = vmatprep.subr.bf16.mxu0 %v2027_v27 }
  0xbb   :  { %1495 = vmatprep.subr.bf16.mxu1 %v2030_v28  ;;  %v270_v28 = vsub.s32 2, %v261_v15 }
  0xbd   :  { %1453 = vmatpush1.bf16.msra.mxu0 %v2025_v29 }
  0xbe   :  { %1496 = vmatpush1.bf16.msra.mxu1 %v2028_v30  ;;  %1454 = vmatprep.subr.bf16.mxu0 %v2033_v31 }
  0xbf   :  { %1497 = vmatprep.subr.bf16.mxu1 %v2036_v32  ;;  %v274_v32 = vsub.s32 3, %v261_v15 }
  0xc1   :  { %1455 = vmatpush1.bf16.msra.mxu0 %v2031_v33 }
  0xc2   :  { %1498 = vmatpush1.bf16.msra.mxu1 %v2034_v34  ;;  %1456 = vmatprep.subr.bf16.mxu0 %v2039_v35 }
  0xc3   :  { %1499 = vmatprep.subr.bf16.mxu1 %v2042_v36 }
  0xc5   :  { %1457 = vmatpush1.bf16.msra.mxu0 %v2037_v37  ;;  %v271_v37 = vrot.slane %v258_v20, %v270_v28 }
  0xc6   :  { %1500 = vmatpush1.bf16.msra.mxu1 %v2040_v38  ;;  %1458 = vmatprep.subr.bf16.mxu0 %v2045_v39 }
  0xc7   :  { %1501 = vmatprep.subr.bf16.mxu1 %v2048_v40 }
  0xc9   :  { %1459 = vmatpush2.bf16.msra.mxu0 %v2043_v41  ;;  %v1536_v41 = vld [vmem:[#allocation7] sm:$0xf] }
  0xca   :  { %1502 = vmatpush2.bf16.msra.mxu1 %v2046_v42  ;;  %1460 = vmatprep.subr.bf16.mxu0 %v2051_v43  ;;  %v275_v42 = vrot.slane %v258_v20, %v274_v32 }
  0xcb   :  { %1503 = vmatprep.subr.bf16.mxu1 %v2054_v44 }
  0xcd   :  { %1461 = vmatpush2.bf16.msra.mxu0 %v2049_v45  ;;  %v1545_v45 = vrot.slane %v1536_v41, %v266_v18 }
  0xce   :  { %1504 = vmatpush2.bf16.msra.mxu1 %v2052_v46  ;;  %1462 = vmatprep.subr.bf16.mxu0 %v2057_v47 }
  0xcf   :  { %1505 = vmatprep.subr.bf16.mxu1 %v2060_v48 }
  0xd1   :  { %1463 = vmatpush2.bf16.msra.mxu0 %v2055_v49 }
  0xd2   :  { %1506 = vmatpush2.bf16.msra.mxu1 %v2058_v50  ;;  %1464 = vmatprep.subr.bf16.mxu0 %v2063_v52  ;;  %v1541_v50 = vrot.slane %v1536_v41, %v262_v4 }
  0xd3   :  { %1507 = vmatprep.subr.bf16.mxu1 %v2066_v53 }
  0xd5   :  { %1465 = vmatpush2.bf16.msra.mxu0 %v2061_v54 }
  0xd6   :  { %1508 = vmatpush2.bf16.msra.mxu1 %v2064_v55  ;;  %1466 = vmatprep.subr.bf16.mxu0 %v2069_v56 }
  0xd7   :  { %1509 = vmatprep.subr.bf16.mxu1 %v2072_v57 }
  0xd9   :  { %1467 = vmatpush2.bf16.msra.mxu0 %v2067_v58 }
  0xda   :  { %1510 = vmatpush2.bf16.msra.mxu1 %v2070_v59  ;;  %1468 = vmatprep.subr.bf16.mxu0 %v2075_v60 }
  0xdb   :  { %1511 = vmatprep.subr.bf16.mxu1 %v2078_v61 }
  0xdd   :  { %1469 = vmatpush2.bf16.msra.mxu0 %v2073_v62 }
  0xde   :  { %1512 = vmatpush2.bf16.msra.mxu1 %v2076_v63  ;;  %1470 = vmatprep.subr.bf16.mxu0 %v2081_v0  ;;  %v1549_v63 = vrot.slane %v1536_v41, %v270_v28 }
  0xdf   :  { %1513 = vmatprep.subr.bf16.mxu1 %v2084_v1 }
  0xe1   :  { %1471 = vmatpush2.bf16.msra.mxu0 %v2079_v2 }
  0xe2   :  { %1514 = vmatpush2.bf16.msra.mxu1 %v2082_v3  ;;  %1472 = vmatprep.subr.bf16.mxu0 %v2087_v6 }
  0xe3   :  { %1515 = vmatprep.subr.bf16.mxu1 %v2090_v7  ;;  %v1553_v7 = vrot.slane %v1536_v41, %v274_v32 }
  0xe5   :  { %1473 = vmatpush2.bf16.msra.mxu0 %v2085_v8 }
  0xe6   :  { %1516 = vmatpush2.bf16.msra.mxu1 %v2088_v9 }
  0xe8   :  { %1475 = vmatmul.mubr.bf16.vlgmr.msra.gmra.mxu0 %v2206_v5 }
  0xe9   :  { %1518 = vmatmul.mubr.bf16.vlgmr.msra.gmra.mxu1 %v2213_v10 }
 0x128   :  { %v1304_v11 = vpop.f32.mrf.mxu0 }
 0x129   :  { %v1347_v13 = vpop.f32.mrf.mxu1  ;;  %v1305_v26 = vadd.f32 %v1304_v11, %v263_v24 }
 0x12a   :  { %v1306_v14 = vpop.f32.mrf.mxu0 }
 0x12b   :  { %v1349_v16 = vpop.f32.mrf.mxu1  ;;  %v1307_v51 = vadd.f32 %v1306_v14, %v267_v23  ;;  %v1348_v33 = vadd.f32 %v1347_v13, %v1305_v26 }
 0x12c   :  { %v1308_v17 = vpop.f32.mrf.mxu0 }
 0x12d   :  { %v1351_v19 = vpop.f32.mrf.mxu1  ;;  %v1350_v30 = vadd.f32 %v1349_v16, %v1307_v51  ;;  %v1309_v34 = vadd.f32 %v1308_v17, %v263_v24 }
 0x12e   :  { %v1310_v21 = vpop.f32.mrf.mxu0 }
 0x12f   :  { %v1353_v5 = vpop.f32.mrf.mxu1  ;;  %v1311_v31 = vadd.f32 %v1310_v21, %v267_v23  ;;  %v1352_v43 = vadd.f32 %v1351_v19, %v1309_v34 }
 0x131   :  { %v1354_v39 = vadd.f32 %v1353_v5, %v1311_v31 }
 0x168   :  { %v1390_v22 = vpop.f32.mrf.mxu0 }
 0x169   :  { %v1433_v10 = vpop.f32.mrf.mxu1  ;;  %v1391_v40 = vadd.f32 %v1390_v22, %v1348_v33 }
 0x16a   :  { %v1392_v25 = vpop.f32.mrf.mxu0  ;;  %v1434_v48 = vadd.f32 %v1433_v10, %v271_v37 }
 0x16b   :  { %v1435_v27 = vpop.f32.mrf.mxu1  ;;  %v1393_v35 = vadd.f32 %v1392_v25, %v1350_v30  ;;  %v1528_v49 = vmax.f32 %v1391_v40, 0.0 }
 0x16c   :  { %v1394_v29 = vpop.f32.mrf.mxu0  ;;  %v1436_v55 = vadd.f32 %v1435_v27, %v275_v42 }
 0x16d   :  { %v1437_v36 = vpop.f32.mrf.mxu1  ;;  %v1529_v44 = vmax.f32 %v1393_v35, 0.0  ;;  %v1395_v52 = vadd.f32 %v1394_v29, %v1352_v43  ;;  %v1558_v1 = vmul.f32 %v1541_v50, %v1528_v49  ;;  %v1577_v29 = vstv %s2237_s4 }
 0x16e   :  { %v1396_v38 = vpop.f32.mrf.mxu0  ;;  %v1438_v61 = vadd.f32 %v1437_v36, %v271_v37 }
 0x16f   :  { %v1397_v46 = vadd.f32 %v1396_v38, %v1354_v39  ;;  %v1439_v47 = vpop.f32.mrf.mxu1  ;;  %v1559_v57 = vmul.f32 %v1545_v45, %v1529_v44  ;;  %v1532_v2 = vmax.f32 %v1395_v52, 0.0 }
 0x170   :  { %v1440_v8 = vadd.f32 %v1439_v47, %v275_v42 }
 0x171   :  { %v1533_v58 = vmax.f32 %v1397_v46, 0.0  ;;  %v1566_v15 = vadd.f32 %v1559_v57, %v1558_v1  ;;  %v1562_v20 = vmul.f32 %v1541_v50, %v1532_v2 }
 0x173   :  { %v1563_v13 = vmul.f32 %v1545_v45, %v1533_v58 }
 0x175   :  { %v1571_v24 = vadd.f32 %v1563_v13, %v1562_v20 }
 0x1a8   :  { %v1476_v53 = vpop.f32.mrf.mxu0 }
 0x1a9   :  { %v1519_v54 = vpop.f32.mrf.mxu1  ;;  %v1477_v56 = vadd.f32 %v1476_v53, %v1434_v48 }
 0x1aa   :  { %v1478_v59 = vpop.f32.mrf.mxu0 }
 0x1ab   :  { %v1521_v60 = vpop.f32.mrf.mxu1  ;;  %v1520_v62 = vadd.f32 %v1519_v54, %v1477_v56  ;;  %v1479_v0 = vadd.f32 %v1478_v59, %v1436_v55 }
 0x1ac   :  { %v1480_v3 = vpop.f32.mrf.mxu0 }
 0x1ad   :  { %v1523_v6 = vpop.f32.mrf.mxu1  ;;  %v1530_v9 = vmax.f32 %v1520_v62, 0.0  ;;  %v1522_v11 = vadd.f32 %v1521_v60, %v1479_v0  ;;  %v1481_v12 = vadd.f32 %v1480_v3, %v1438_v61 }
 0x1ae   :  { %v1482_v14 = vpop.f32.mrf.mxu0 }
 0x1af   :  { %v1560_v16 = vmul.f32 %v1549_v63, %v1530_v9  ;;  %v1531_v17 = vmax.f32 %v1522_v11, 0.0  ;;  %v1524_v18 = vadd.f32 %v1523_v6, %v1481_v12  ;;  %v1483_v19 = vadd.f32 %v1482_v14, %v1440_v8  ;;  %v1525_v21 = vpop.f32.mrf.mxu1 }
 0x1b1   :  { %v1534_v4 = vmax.f32 %v1524_v18, 0.0  ;;  %v1526_v22 = vadd.f32 %v1525_v21, %v1483_v19  ;;  %v1561_v23 = vmul.f32 %v1553_v7, %v1531_v17  ;;  %v1567_v5 = vadd.f32 %v1566_v15, %v1560_v16 }
 0x1b3   :  { %v1564_v10 = vmul.f32 %v1549_v63, %v1534_v4  ;;  %v1535_v25 = vmax.f32 %v1526_v22, 0.0  ;;  %v1568_v51 = vadd.f32 %v1567_v5, %v1561_v23 }
 0x1b5   :  { %v1565_v26 = vmul.f32 %v1553_v7, %v1535_v25  ;;  %1569 = vadd.xlane.f32.xlu0 %v1568_v51  ;;  %v1572_v27 = vadd.f32 %v1571_v24, %v1564_v10 }
 0x1b7   :  { %v1573_v28 = vadd.f32 %v1572_v27, %v1565_v26 }
 0x1b9   :  { %1574 = vadd.xlane.f32.xlu0 %v1573_v28 }
 0x23e   :  { %v1570_v30 = vpop.xlane.xlu0 %1569 }
 0x23f   :  { %v1578_v31 = vadd.f32 %v1577_v29, %v1570_v30 }
 0x241   :  { %1581 = vst.msk [vmem:[%s2238_s5] sm:$0xff] %vm1580_vm0, %v1578_v31 }
 0x242   :  { %v1575_v32 = vpop.xlane.xlu0 %1574 }
 0x243   :  { %v1579_v33 = vadd.f32 %v1577_v29, %v1575_v32 }
 0x245   :  { %1582 = vst.msk [vmem:[%s2238_s5 + $0x8] sm:$0xff] %vm1580_vm0, %v1579_v33 }
 0x246   :  { %1587 = vsyncpa [#allocation4], 1 }
 0x247   :  { %1588 = vsyncpa [#allocation6], 1 }

</bundles_post_ra>
